<compile_context>
chip_gen: v7x
topology: tpu7x:2x2x1
jax: 0.10.0
libtpu: 0.0.40
codegen_flags: <defaults>
</compile_context>

<pallas_src>
import numpy as np
import jax
import jax.numpy as jnp
from jax.experimental import pallas as pl
from jax.experimental.pallas import tpu as pltpu

NUM_JOINTS = 24
SMPL_PARENTS = np.array(
    [-1, 0, 0, 0, 1, 2, 3, 4, 5, 6, 7, 8, 9, 9, 9, 12, 13, 14, 16, 17, 18,
     19, 20, 21], dtype=np.int64)


def inverse_sigmoid(x):
    return jnp.log(x / (1.0 - x))


# ---------------------------------------------------------------------------
# Pallas kernel: fused per-vertex hot path (channel-major, lane-dense)
# ---------------------------------------------------------------------------
def smpl_forward_kernel(a12t_ref, tcol_ref, wt_ref, vt_ref, disp_ref, g_ref,
                        tv_out, g_out):
    # --- LBS blend on the MXU: [12, J] @ [J, TN] -> [12, TN] (vertices on lanes).
    # W^T streams from HBM as bf16; upcast + full-precision f32 accumulate.
    w = wt_ref[...].astype(jnp.float32)
    t12 = jnp.dot(a12t_ref[0], w,
                  preferred_element_type=jnp.float32,
                  precision=jax.lax.Precision.HIGHEST)
    # transl is added per vertex AFTER the blend (exact module semantics even if
    # the learnable skinning weights stop summing to 1 during training).
    tv_out[0, 0:12, :] = t12 + tcol_ref[0]
    # Displaced vertices packed into rows 12..14 of the same 16-row output slab.
    tv_out[0, 12:15, :] = vt_ref[0] + disp_ref[0]
    tv_out[0, 15:16, :] = jnp.zeros((1, t12.shape[1]), jnp.float32)  # pad row

    # --- Packed gaussian activations, all as full [8, TN] vregs (no sublane
    # slicing): row 0 opacity logit, rows 1..3 log-scales, rows 4..7 rotations.
    g = g_ref[0]
    row = jax.lax.broadcasted_iota(jnp.int32, g.shape, 0)
    is_rot = row >= 4
    sig = 0.5 * (jnp.tanh(0.5 * g) + 1.0)            # sigmoid, stays on the EUP
    ex = jnp.exp(g)                                  # exp(scales)
    sq = jnp.where(is_rot, g * g, 0.0)
    ss = jnp.sum(sq, axis=0, keepdims=True)          # ||rotation||^2 per vertex
    rn = g * jax.lax.rsqrt(jnp.maximum(ss, 1e-24))   # F.normalize (eps=1e-12)
    g_out[0] = jnp.where(row == 0, sig, jnp.where(is_rot, rn, ex))


# ---------------------------------------------------------------------------
# Tiling: biggest lane tile (<= max_tile, multiple of 128) minimizing
# padded-bytes + per-grid-step overhead; never asserts on n_per.
# ---------------------------------------------------------------------------
_STEP_OVERHEAD_VERTICES = 2048   # ~0.35us fixed grid-step cost, in "vertices"


def _round_up(x, m):
    return (x + m - 1) // m * m


def _choose_tile(n_per, max_tile=8192):
    max_tile = max(int(max_tile), 128)
    n_per = int(n_per)
    n128 = _round_up(max(n_per, 1), 128)
    best = None
    t = 128
    while t <= min(max_tile, n128):
        n_pad = _round_up(n_per, t)
        cost = n_pad + (n_pad // t) * _STEP_OVERHEAD_VERTICES
        if best is None or cost < best[0]:
            best = (cost, t, n_pad)
        t += 128
    _, tile_n, n_pad = best
    return tile_n, n_pad


def smpl_pallas_forward(A12T, tcol, WT, v_template_t, displacements_t, gauss_t,
                        *, max_tile=8192):
    P, _, n_per = v_template_t.shape
    J = WT.shape[0]
    tile_n, n_pad = _choose_tile(n_per, max_tile)
    if n_pad != n_per:
        # TODO(synk): for real meshes bake this padding into the parameters at
        # init time so it is not an extra HBM pass on every forward call.
        pad = n_pad - n_per
        WT = jnp.pad(WT, ((0, 0), (0, pad)))
        v_template_t = jnp.pad(v_template_t, ((0, 0), (0, 0), (0, pad)))
        displacements_t = jnp.pad(displacements_t, ((0, 0), (0, 0), (0, pad)))
        gauss_t = jnp.pad(gauss_t, ((0, 0), (0, 0), (0, pad)))
    n_tiles = n_pad // tile_n

    # Grid (n_tiles, P): p is INNERMOST, so the W^T block (i-only index) stays
    # resident across players; A12^T / tcol are tiny and re-fetched for free.
    in_specs = [
        pl.BlockSpec((1, 12, J), lambda i, p: (p, 0, 0)),        # A12^T
        pl.BlockSpec((1, 12, 1), lambda i, p: (p, 0, 0)),        # transl column
        pl.BlockSpec((J, tile_n), lambda i, p: (0, i)),          # W^T (bf16)
        pl.BlockSpec((1, 3, tile_n), lambda i, p: (p, 0, i)),    # v_template^T
        pl.BlockSpec((1, 3, tile_n), lambda i, p: (p, 0, i)),    # displacements^T
        pl.BlockSpec((1, 8, tile_n), lambda i, p: (p, 0, i)),    # packed gaussians
    ]
    out_specs = (
        pl.BlockSpec((1, 16, tile_n), lambda i, p: (p, 0, i)),   # rows 0:12 T, 12:15 verts
        pl.BlockSpec((1, 8, tile_n), lambda i, p: (p, 0, i)),    # activated gaussians
    )
    out_shapes = (
        jax.ShapeDtypeStruct((P, 16, n_pad), jnp.float32),
        jax.ShapeDtypeStruct((P, 8, n_pad), jnp.float32),
    )

    bytes_accessed = int(
        P * 12 * J * 4 + P * 12 * 4 + J * n_pad * 2            # A12T, tcol, W^T(bf16)
        + 2 * P * 3 * n_pad * 4 + P * 8 * n_pad * 4            # vt, disp, gauss in
        + P * 16 * n_pad * 4 + P * 8 * n_pad * 4)              # outputs
    cost = pl.CostEstimate(flops=int(2 * 12 * J * n_pad * P),
                           transcendentals=int(3 * 8 * n_pad * P),
                           bytes_accessed=bytes_accessed)

    tv, g = pl.pallas_call(
        smpl_forward_kernel,
        out_shape=out_shapes,
        grid_spec=pltpu.PrefetchScalarGridSpec(
            num_scalar_prefetch=0,
            grid=(n_tiles, P),
            in_specs=in_specs,
            out_specs=out_specs),
        compiler_params=pltpu.CompilerParams(
            dimension_semantics=("parallel", "parallel"),
            vmem_limit_bytes=32 * 1024 * 1024),
        cost_estimate=cost,
    )(A12T, tcol, WT, v_template_t, displacements_t, gauss_t)

    if n_pad != n_per:
        tv = tv[..., :n_per]
        g = g[..., :n_per]
    return tv, g


# ---------------------------------------------------------------------------
# Plain-JAX glue: Rodrigues + kinematic chain (24 joints -> tiny, sequential)
# ---------------------------------------------------------------------------
def batch_rodrigues(rot_vecs):
    angle = jnp.linalg.norm(rot_vecs + 1e-8, axis=1, keepdims=True)
    rot_dir = rot_vecs / angle
    cos = jnp.cos(angle)[:, None]
    sin = jnp.sin(angle)[:, None]
    rx, ry, rz = jnp.split(rot_dir, 3, axis=1)
    zeros = jnp.zeros_like(rx)
    K = jnp.concatenate(
        [zeros, -rz, ry, rz, zeros, -rx, -ry, rx, zeros],
        axis=1).reshape(-1, 3, 3)
    ident = jnp.eye(3, dtype=rot_vecs.dtype)[None]
    return ident + sin * K + (1.0 - cos) * jnp.matmul(K, K)


def batch_rigid_transform(rot_mats, joints, parents):
    P, J = joints.shape[:2]
    joints = joints[..., None]                                    # [P,J,3,1]
    rel_joints = joints.at[:, 1:].set(joints[:, 1:] - joints[:, parents[1:]])
    R = rot_mats.reshape(-1, 3, 3)
    t = rel_joints.reshape(-1, 3, 1)
    top = jnp.concatenate([R, t], axis=-1)                        # [PJ,3,4]
    bottom = jnp.tile(jnp.array([[[0., 0., 0., 1.]]], dtype=R.dtype),
                      (R.shape[0], 1, 1))
    transforms_mat = jnp.concatenate([top, bottom], axis=1).reshape(P, J, 4, 4)

    chain = [transforms_mat[:, 0]]
    for i in range(1, J):
        chain.append(jnp.matmul(chain[int(parents[i])], transforms_mat[:, i]))
    transforms = jnp.stack(chain, axis=1)                         # [P,J,4,4]

    joints_h = jnp.concatenate(
        [joints, jnp.zeros((P, J, 1, 1), dtype=joints.dtype)], axis=2)
    init_bone = jnp.matmul(transforms, joints_h)                  # [P,J,4,1]
    init_bone = jnp.pad(init_bone, ((0, 0), (0, 0), (0, 0), (3, 0)))
    return transforms - init_bone                                 # rel transforms


# ---------------------------------------------------------------------------
# Parameter init (deterministic, synthetic — mirrors the shapes of __init__).
# Per-vertex parameters stored channel-major ([C, N]) for TPU lane density;
# opacity/scales/rotations packed into one 8-row slab per player.
# ---------------------------------------------------------------------------
def init_smpl_params(key, num_players=2, v_base=128, num_repeat=2):
    keys = jax.random.split(key, 6)
    P = num_players

    v_template_base = jax.random.normal(keys[0], (v_base, 3), jnp.float32) * 0.3
    w_raw = jax.random.uniform(keys[1], (v_base, NUM_JOINTS), jnp.float32)
    weights_base = w_raw / jnp.sum(w_raw, axis=1, keepdims=True)
    J = jnp.tile(jax.random.normal(keys[2], (1, NUM_JOINTS, 3),
                                   jnp.float32) * 0.2, (P, 1, 1))

    v_template = jnp.tile(v_template_base[None], (P, 1, 1))       # [P, v_base, 3]
    # TODO(synk): distCUDA2 (simple_knn CUDA op) has no Pallas equivalent; it is
    # init-time only, so a deterministic synthetic nn-distance is used instead.
    dist2 = jax.random.uniform(keys[3], (v_base,), jnp.float32, 1e-3, 1e-2)
    dist2 = jnp.clip(dist2, 1e-7, None)[:, None]
    dist2 = jnp.tile(dist2, (num_repeat, 3))                      # [n_per, 3]
    v_template = jnp.tile(v_template, (1, num_repeat, 1))         # [P, n_per, 3]
    jitter = jax.random.uniform(keys[4], v_template.shape, jnp.float32) - 0.5
    v_template = v_template + jitter * dist2[None] * 20.0
    dist2 = dist2 / num_repeat

    weights = jnp.tile(weights_base, (num_repeat, 1))             # [n_per, J]

    n_per = v_base * num_repeat
    n = n_per * P

    lo = jnp.min(v_template[0], axis=0) * 1.05
    hi = jnp.max(v_template[0], axis=0) * 1.05
    normalized_vertices = (v_template - lo) / (hi - lo)           # unused w/ these flags

    opacity = inverse_sigmoid(0.2 * jnp.ones((n, 1), jnp.float32))
    scales = jnp.tile(jnp.log(jnp.sqrt(dist2)), (P, 1))           # [n, 3]
    rotations = jnp.zeros((n, 4), jnp.float32).at[:, 0].set(1.0)

    # Packed channel-major gaussian params [P, 8, n_per]:
    #   row 0 -> opacity logit, rows 1..3 -> log scales, rows 4..7 -> rotations.
    gauss = jnp.concatenate([opacity, scales, rotations], axis=1)  # [n, 8]
    gauss_t = jnp.transpose(gauss.reshape(P, n_per, 8), (0, 2, 1))

    params = dict(
        v_template_t=jnp.transpose(v_template, (0, 2, 1)),        # [P, 3, n_per]
        displacements_t=jnp.zeros((P, 3, n_per), jnp.float32),    # use_point_displacement
        # bf16 streaming copy of the skinning weights (largest read stream);
        # a training master copy would stay f32 outside the kernel.
        weights_t=weights.T.astype(jnp.bfloat16),                 # [J, n_per]
        gauss_t=gauss_t,                                          # [P, 8, n_per]
        J=J,
        shs_dc=jnp.zeros((n, 1, 3), jnp.float32),                 # use_point_color
        shs_rest=jnp.zeros((n, 0, 3), jnp.float32),               # (0+1)^2 - 1 == 0
        aos=jnp.ones((n, 1), jnp.float32),
        normalized_vertices=normalized_vertices,
    )
    return params


# ---------------------------------------------------------------------------
# Full forward (matches SMPLModel.forward return signature / layouts).
# channel_major_outputs=True skips the [N,C] transpose pass and returns the
# lane-dense kernel layouts directly for downstream consumers that accept them.
# ---------------------------------------------------------------------------
def smpl_forward(params, body_pose, global_orient, transl, time,
                 max_tile=8192, channel_major_outputs=False):
    del time  # only used by the AO encoder branch (disabled here)
    P = body_pose.shape[0]

    full_body_pose = jnp.concatenate([global_orient[:, None, :], body_pose],
                                     axis=1)                      # [P, J, 3]
    rot_mats = batch_rodrigues(full_body_pose.reshape(-1, 3)).reshape(
        P, NUM_JOINTS, 3, 3)
    A = batch_rigid_transform(rot_mats, params['J'], SMPL_PARENTS)  # [P,J,4,4]

    # Only the top 3 rows of the 4x4 are consumed downstream -> 12 channels.
    A12T = jnp.transpose(A[:, :, :3, :].reshape(P, NUM_JOINTS, 12),
                         (0, 2, 1))                               # [P, 12, J]
    # Global translation as a [12,1] column added inside the kernel
    # (flattened-3x4 positions 3, 7, 11). Kept as an explicit add (not folded
    # into A) so semantics hold even if skinning weights drift from sum==1.
    tcol = jnp.zeros((P, 12), jnp.float32)
    tcol = (tcol.at[:, 3].set(transl[:, 0])
                 .at[:, 7].set(transl[:, 1])
                 .at[:, 11].set(transl[:, 2]))[:, :, None]        # [P, 12, 1]

    tvT, gT = smpl_pallas_forward(
        A12T, tcol, params['weights_t'], params['v_template_t'],
        params['displacements_t'], params['gauss_t'], max_tile=max_tile)

    shs = jnp.concatenate([params['shs_dc'], params['shs_rest']], axis=1)
    aos = params['aos']

    if channel_major_outputs:
        # tvT[:, :12] -> per-vertex 3x4 transforms (channel-major),
        # tvT[:, 12:15] -> displaced vertices, gT rows 0 / 1:4 / 4:8 ->
        # opacity / scales / rotations.
        return tvT, gT, shs, aos

    # Module-native [N, C] layout (costs one extra HBM transpose pass).
    T = jnp.transpose(tvT[:, 0:12], (0, 2, 1)).reshape(-1, 3, 4)
    vertices = jnp.transpose(tvT[:, 12:15], (0, 2, 1)).reshape(-1, 3)
    g = jnp.transpose(gT, (0, 2, 1)).reshape(-1, 8)
    opacity = g[:, 0:1]
    scales = g[:, 1:4]
    rotations = g[:, 4:8]
    return vertices, opacity, scales, rotations, shs, aos, T


# ---------------------------------------------------------------------------
if __name__ == "__main__":
    key = jax.random.PRNGKey(0)
    P, V_BASE, NUM_REPEAT, MAX_FREQ = 2, 128, 2, 4   # n_per=256, N=512

    pkey, kg, kd, k1, k2, k3 = jax.random.split(key, 6)
    params = init_smpl_params(pkey, num_players=P, v_base=V_BASE,
                              num_repeat=NUM_REPEAT)

    # Perturb the learnable parameters so every activation path is exercised
    # with non-trivial values (the module init alone is mostly zeros/ones).
    params['gauss_t'] = params['gauss_t'] + 0.3 * jax.random.normal(
        kg, params['gauss_t'].shape, jnp.float32)
    params['displacements_t'] = 0.05 * jax.random.normal(
        kd, params['displacements_t'].shape, jnp.float32)

    body_pose = jax.random.normal(k1, (P, NUM_JOINTS - 1, 3), jnp.float32) * 0.2
    global_orient = jax.random.normal(k2, (P, 3), jnp.float32) * 0.2
    transl = jax.random.normal(k3, (P, 3), jnp.float32)
    time = jnp.linspace(0.0, 1.0, MAX_FREQ * 2 + 1, dtype=jnp.float32)

    fwd = jax.jit(smpl_forward,
                  static_argnames=("max_tile", "channel_major_outputs"))
    outs = jax.block_until_ready(fwd(params, body_pose, global_orient,
                                     transl, time))
    vertices, opacity, scales, rotations, shs, aos, T = outs

    # --- pure-JAX reference of the forward pass ------------------------------
    full_body_pose = jnp.concatenate([global_orient[:, None, :], body_pose], 1)
    rot_mats = batch_rodrigues(full_body_pose.reshape(-1, 3)).reshape(
        P, NUM_JOINTS, 3, 3)
    A = batch_rigid_transform(rot_mats, params['J'], SMPL_PARENTS)
    A12 = A[:, :, :3, :].reshape(P, NUM_JOINTS, 12)
    W = params['weights_t'].astype(jnp.float32).T                 # [n_per, J]
    T_ref = jnp.einsum('nj,pjk->pnk', W, A12,
                       precision=jax.lax.Precision.HIGHEST)
    T_ref = (T_ref.at[:, :, 3].add(transl[:, None, 0])
                   .at[:, :, 7].add(transl[:, None, 1])
                   .at[:, :, 11].add(transl[:, None, 2])).reshape(-1, 3, 4)

    g_flat = jnp.transpose(params['gauss_t'], (0, 2, 1)).reshape(-1, 8)
    op_ref = jax.nn.sigmoid(g_flat[:, 0:1])
    sc_ref = jnp.exp(g_flat[:, 1:4])
    r = g_flat[:, 4:8]
    rot_ref = r / jnp.maximum(jnp.linalg.norm(r, axis=1, keepdims=True), 1e-12)
    v_ref = jnp.transpose(params['v_template_t'] + params['displacements_t'],
                          (0, 2, 1)).reshape(-1, 3)

    np.testing.assert_allclose(np.asarray(T), np.asarray(T_ref),
                               rtol=1e-5, atol=1e-5)
    np.testing.assert_allclose(np.asarray(vertices), np.asarray(v_ref),
                               rtol=1e-5, atol=1e-6)
    np.testing.assert_allclose(np.asarray(opacity), np.asarray(op_ref),
                               rtol=1e-4, atol=1e-5)
    np.testing.assert_allclose(np.asarray(scales), np.asarray(sc_ref),
                               rtol=1e-4, atol=1e-5)
    np.testing.assert_allclose(np.asarray(rotations), np.asarray(rot_ref),
                               rtol=1e-4, atol=1e-5)
    assert shs.shape == (P * V_BASE * NUM_REPEAT, 1, 3)
    assert aos.shape == (P * V_BASE * NUM_REPEAT, 1)

    # Multi-tile grid path (forced small tile) must agree with the big-tile path.
    outs_small = jax.block_until_ready(fwd(params, body_pose, global_orient,
                                           transl, time, max_tile=128))
    for a, b in zip(outs, outs_small):
        np.testing.assert_allclose(np.asarray(a), np.asarray(b),
                                   rtol=1e-6, atol=1e-6)

    print("KERNEL_OK")
</pallas_src>

<mosaic_0001>
module attributes {stable_mosaic.version = 11 : i64} {
  func.func @smpl_forward_kernel(%arg0: i32, %arg1: i32, %arg2: memref<1x12x24xf32, #tpu.memory_space<vmem>>, %arg3: memref<1x12x1xf32, #tpu.memory_space<vmem>>, %arg4: memref<24x256xbf16, #tpu.memory_space<vmem>>, %arg5: memref<1x3x256xf32, #tpu.memory_space<vmem>>, %arg6: memref<1x3x256xf32, #tpu.memory_space<vmem>>, %arg7: memref<1x8x256xf32, #tpu.memory_space<vmem>>, %arg8: memref<1x16x256xf32, #tpu.memory_space<vmem>>, %arg9: memref<1x8x256xf32, #tpu.memory_space<vmem>>) attributes {dimension_semantics = [#tpu.dimension_semantics<parallel>, #tpu.dimension_semantics<parallel>], iteration_bounds = array<i64: 1, 2>, scalar_prefetch = 0 : i64, scratch_operands = 0 : i64, tpu.core_type = #tpu.core_type<tc>, window_params = [{transform_indices = @transform_0, window_bounds = array<i64: 1, 12, 24>}, {transform_indices = @transform_1, window_bounds = array<i64: 1, 12, 1>}, {transform_indices = @transform_2, window_bounds = array<i64: 24, 256>}, {transform_indices = @transform_3, window_bounds = array<i64: 1, 3, 256>}, {transform_indices = @transform_4, window_bounds = array<i64: 1, 3, 256>}, {transform_indices = @transform_5, window_bounds = array<i64: 1, 8, 256>}, {transform_indices = @transform_6, window_bounds = array<i64: 1, 16, 256>}, {transform_indices = @transform_7, window_bounds = array<i64: 1, 8, 256>}]} {
    %c0 = arith.constant 0 : index
    %c0_0 = arith.constant 0 : index
    %0 = vector.load %arg4[%c0, %c0_0] : memref<24x256xbf16, #tpu.memory_space<vmem>>, vector<24x256xbf16>
    %1 = arith.extf %0 : vector<24x256xbf16> to vector<24x256xf32>
    %c0_1 = arith.constant 0 : index
    %c0_2 = arith.constant 0 : index
    %c0_3 = arith.constant 0 : index
    %2 = vector.load %arg2[%c0_1, %c0_2, %c0_3] : memref<1x12x24xf32, #tpu.memory_space<vmem>>, vector<1x12x24xf32>
    %3 = vector.shape_cast %2 : vector<1x12x24xf32> to vector<12x24xf32>
    %cst = arith.constant dense<0.000000e+00> : vector<12x256xf32>
    %4 = tpu.matmul %3, %1, %cst {dimension_numbers = #tpu.dot_dimension_numbers<[1], [0], [0], [1], [0, 0, 1, 1], [], []>, precision = #tpu.contract_precision<fp32>} : vector<12x24xf32>, vector<24x256xf32>, vector<12x256xf32> -> vector<12x256xf32>
    %c0_4 = arith.constant 0 : index
    %c0_5 = arith.constant 0 : index
    %c0_6 = arith.constant 0 : index
    %5 = vector.load %arg3[%c0_4, %c0_5, %c0_6] : memref<1x12x1xf32, #tpu.memory_space<vmem>>, vector<1x12x1xf32>
    %6 = vector.shape_cast %5 : vector<1x12x1xf32> to vector<12x1xf32>
    %7 = vector.broadcast %6 : vector<12x1xf32> to vector<12x256xf32>
    %8 = arith.addf %4, %7 : vector<12x256xf32>
    %c0_7 = arith.constant 0 : index
    %c0_8 = arith.constant 0 : index
    %c0_9 = arith.constant 0 : index
    %9 = vector.load %arg8[%c0_7, %c0_8, %c0_9] : memref<1x16x256xf32, #tpu.memory_space<vmem>>, vector<1x12x256xf32>
    %10 = vector.shape_cast %9 : vector<1x12x256xf32> to vector<12x256xf32>
    %11 = vector.shape_cast %8 : vector<12x256xf32> to vector<1x12x256xf32>
    tpu.vector_store %arg8[%c0_7, %c0_8, %c0_9], %11 {strides = array<i32>} : memref<1x16x256xf32, #tpu.memory_space<vmem>>, vector<1x12x256xf32>,
    %c0_10 = arith.constant 0 : index
    %c0_11 = arith.constant 0 : index
    %c0_12 = arith.constant 0 : index
    %12 = vector.load %arg5[%c0_10, %c0_11, %c0_12] : memref<1x3x256xf32, #tpu.memory_space<vmem>>, vector<1x3x256xf32>
    %13 = vector.shape_cast %12 : vector<1x3x256xf32> to vector<3x256xf32>
    %c0_13 = arith.constant 0 : index
    %c0_14 = arith.constant 0 : index
    %c0_15 = arith.constant 0 : index
    %14 = vector.load %arg6[%c0_13, %c0_14, %c0_15] : memref<1x3x256xf32, #tpu.memory_space<vmem>>, vector<1x3x256xf32>
    %15 = vector.shape_cast %14 : vector<1x3x256xf32> to vector<3x256xf32>
    %16 = arith.addf %13, %15 : vector<3x256xf32>
    %c0_16 = arith.constant 0 : index
    %c12 = arith.constant 12 : index
    %c0_17 = arith.constant 0 : index
    %17 = vector.load %arg8[%c0_16, %c12, %c0_17] : memref<1x16x256xf32, #tpu.memory_space<vmem>>, vector<1x3x256xf32>
    %18 = vector.shape_cast %17 : vector<1x3x256xf32> to vector<3x256xf32>
    %19 = vector.shape_cast %16 : vector<3x256xf32> to vector<1x3x256xf32>
    tpu.vector_store %arg8[%c0_16, %c12, %c0_17], %19 {strides = array<i32>} : memref<1x16x256xf32, #tpu.memory_space<vmem>>, vector<1x3x256xf32>,
    %cst_18 = arith.constant 0.000000e+00 : f32
    %20 = vector.broadcast %cst_18 : f32 to vector<1x256xf32>
    %c0_19 = arith.constant 0 : index
    %c15 = arith.constant 15 : index
    %c0_20 = arith.constant 0 : index
    %21 = vector.load %arg8[%c0_19, %c15, %c0_20] : memref<1x16x256xf32, #tpu.memory_space<vmem>>, vector<1x1x256xf32>
    %22 = vector.shape_cast %21 : vector<1x1x256xf32> to vector<1x256xf32>
    %23 = vector.shape_cast %20 : vector<1x256xf32> to vector<1x1x256xf32>
    tpu.vector_store %arg8[%c0_19, %c15, %c0_20], %23 {strides = array<i32>} : memref<1x16x256xf32, #tpu.memory_space<vmem>>, vector<1x1x256xf32>,
    %c0_21 = arith.constant 0 : index
    %c0_22 = arith.constant 0 : index
    %c0_23 = arith.constant 0 : index
    %24 = vector.load %arg7[%c0_21, %c0_22, %c0_23] : memref<1x8x256xf32, #tpu.memory_space<vmem>>, vector<1x8x256xf32>
    %25 = vector.shape_cast %24 : vector<1x8x256xf32> to vector<8x256xf32>
    %26 = tpu.iota {dimensions = array<i32: 0>} : vector<8x256xi32>
    %c4_i32 = arith.constant 4 : i32
    %27 = vector.broadcast %c4_i32 : i32 to vector<8x256xi32>
    %28 = arith.cmpi sge, %26, %27 : vector<8x256xi32>
    %cst_24 = arith.constant 5.000000e-01 : f32
    %29 = vector.broadcast %cst_24 : f32 to vector<8x256xf32>
    %30 = arith.mulf %29, %25 : vector<8x256xf32>
    %31 = math.tanh %30 : vector<8x256xf32>
    %cst_25 = arith.constant 1.000000e+00 : f32
    %32 = vector.broadcast %cst_25 : f32 to vector<8x256xf32>
    %33 = arith.addf %31, %32 : vector<8x256xf32>
    %cst_26 = arith.constant 5.000000e-01 : f32
    %34 = vector.broadcast %cst_26 : f32 to vector<8x256xf32>
    %35 = arith.mulf %34, %33 : vector<8x256xf32>
    %36 = math.exp %25 : vector<8x256xf32>
    %37 = arith.mulf %25, %25 : vector<8x256xf32>
    %cst_27 = arith.constant 0.000000e+00 : f32
    %38 = vector.broadcast %cst_27 : f32 to vector<8x256xf32>
    %39 = arith.select %28, %37, %38 : vector<8x256xi1>, vector<8x256xf32>
    %cst_28 = arith.constant dense<0.000000e+00> : vector<256xf32>
    %40 = vector.multi_reduction <add>, %39, %cst_28 [0] : vector<8x256xf32> to vector<256xf32>
    %41 = vector.shape_cast %40 : vector<256xf32> to vector<1x256xf32>
    %cst_29 = arith.constant 1.000000e-24 : f32
    %42 = vector.broadcast %cst_29 : f32 to vector<1x256xf32>
    %43 = arith.maximumf %41, %42 : vector<1x256xf32>
    %44 = math.rsqrt %43 : vector<1x256xf32>
    %45 = vector.broadcast %44 : vector<1x256xf32> to vector<8x256xf32>
    %46 = arith.mulf %25, %45 : vector<8x256xf32>
    %c0_i32 = arith.constant 0 : i32
    %47 = vector.broadcast %c0_i32 : i32 to vector<8x256xi32>
    %48 = arith.cmpi eq, %26, %47 : vector<8x256xi32>
    %49 = arith.select %28, %46, %36 : vector<8x256xi1>, vector<8x256xf32>
    %50 = arith.select %48, %35, %49 : vector<8x256xi1>, vector<8x256xf32>
    %c0_30 = arith.constant 0 : index
    %c0_31 = arith.constant 0 : index
    %c0_32 = arith.constant 0 : index
    %51 = vector.load %arg9[%c0_30, %c0_31, %c0_32] : memref<1x8x256xf32, #tpu.memory_space<vmem>>, vector<1x8x256xf32>
    %52 = vector.shape_cast %51 : vector<1x8x256xf32> to vector<8x256xf32>
    %53 = vector.shape_cast %50 : vector<8x256xf32> to vector<1x8x256xf32>
    tpu.vector_store %arg9[%c0_30, %c0_31, %c0_32], %53 {strides = array<i32>} : memref<1x8x256xf32, #tpu.memory_space<vmem>>, vector<1x8x256xf32>,
    return
  }
  func.func @transform_0(%arg0: i32, %arg1: i32) -> (i32, i32, i32) {
    %c0_i32 = arith.constant 0 : i32
    %c0_i32_0 = arith.constant 0 : i32
    %c0_i32_1 = arith.constant 0 : i32
    return %arg1, %c0_i32, %c0_i32_0 : i32, i32, i32
  }
  func.func @transform_1(%arg0: i32, %arg1: i32) -> (i32, i32, i32) {
    %c0_i32 = arith.constant 0 : i32
    %c0_i32_0 = arith.constant 0 : i32
    %c0_i32_1 = arith.constant 0 : i32
    return %arg1, %c0_i32, %c0_i32_0 : i32, i32, i32
  }
  func.func @transform_2(%arg0: i32, %arg1: i32) -> (i32, i32) {
    %c0_i32 = arith.constant 0 : i32
    %c0_i32_0 = arith.constant 0 : i32
    return %c0_i32, %arg0 : i32, i32
  }
  func.func @transform_3(%arg0: i32, %arg1: i32) -> (i32, i32, i32) {
    %c0_i32 = arith.constant 0 : i32
    %c0_i32_0 = arith.constant 0 : i32
    return %arg1, %c0_i32, %arg0 : i32, i32, i32
  }
  func.func @transform_4(%arg0: i32, %arg1: i32) -> (i32, i32, i32) {
    %c0_i32 = arith.constant 0 : i32
    %c0_i32_0 = arith.constant 0 : i32
    return %arg1, %c0_i32, %arg0 : i32, i32, i32
  }
  func.func @transform_5(%arg0: i32, %arg1: i32) -> (i32, i32, i32) {
    %c0_i32 = arith.constant 0 : i32
    %c0_i32_0 = arith.constant 0 : i32
    return %arg1, %c0_i32, %arg0 : i32, i32, i32
  }
  func.func @transform_6(%arg0: i32, %arg1: i32) -> (i32, i32, i32) {
    %c0_i32 = arith.constant 0 : i32
    %c0_i32_0 = arith.constant 0 : i32
    return %arg1, %c0_i32, %arg0 : i32, i32, i32
  }
  func.func @transform_7(%arg0: i32, %arg1: i32) -> (i32, i32, i32) {
    %c0_i32 = arith.constant 0 : i32
    %c0_i32_0 = arith.constant 0 : i32
    return %arg1, %c0_i32, %arg0 : i32, i32, i32
  }
}

</mosaic_0001>

<bundles_post_ra>
// kernel: smpl_forward.1
= control target key start
LH: loop header
LB: loop body
LE: loop exit
PB: predicated region body
PF: predicated region fallthrough
CT: control target
= control target key end

     0   :  { %s1504_s24 = smov 0   ;;  %s1506_s25 = smov 0   ;;  %s1699_s0 = inlined_call_operand.vmem [shape: f32[2,12,24], index: 0, kind: input, shape index: {}]   ;;  %s1700_s1 = inlined_call_operand.vmem [shape: f32[2,12,1], index: 1, kind: input, shape index: {}]   ;;  %s1701_s2 = inlined_call_operand.vmem [shape: bf16[24,256], index: 2, kind: input, shape index: {}]   ;;  %s1702_s3 = inlined_call_operand.vmem [shape: f32[2,3,256], index: 3, kind: input, shape index: {}]   ;;  %s1703_s4 = inlined_call_operand.vmem [shape: f32[2,3,256], index: 4, kind: input, shape index: {}]   ;;  %s1704_s5 = inlined_call_operand.vmem [shape: f32[2,8,256], index: 5, kind: input, shape index: {}]   ;;  %s1705_s6 = inlined_call_operand.vmem [shape: f32[2,16,256], index: 6, kind: output, shape index: {0}]   ;;  %s1706_s7 = inlined_call_operand.vmem [shape: f32[2,8,256], index: 7, kind: output, shape index: {1}]  }
   0x1   :  { %s1508_s26 = smov 0  }
   0x2 LB: > { %s27_s27 = sadd.s32 1, %s1456_s25  ;;  %p1318_p0 = scmp.ge.s32.totalorder %s1460_s26, 1  ;;  %s1460_s26 = sphi %s1508_s26, %s18_s26   ;;  %s1456_s25 = sphi %s1506_s25, %s1708_s25   ;;  %s1452_s24 = sphi %s1504_s24, %s1707_s24  }
   0x3   : > { %p28_p1 = scmp.ge.s32.totalorder %s27_s27, 2  ;;  %p328_p2 = scmp.lt.s32.totalorder %s1460_s26, 3 }
   0x5   : > { %s1710_s27 = smov (%p28_p1, %s27_s27), 0  ;;  %p329_p3 = pnand %p1318_p0, %p328_p2 }
   0x6   : > { %v476_v0 = vld [vmem:[%s1701_s2] sm:$0xff] (!%p329_p3)  ;;  %v477_v1 = vld [vmem:[%s1701_s2 + $0x8] sm:$0xff] (!%p329_p3)  ;;  %v478_v2 = vld [vmem:[%s1701_s2 + $0x10] sm:$0xff] (!%p329_p3)  ;;  %p410_p4 = scmp.lt.s32.totalorder (!%p329_p3), %s1452_s24, 1  ;;  %v1048_v3 = vlaneseq (!%p329_p3)  ;;  %v1462_v8 = vmov (!%p329_p3), 0.0   ;;  %vm499_vm0 = vcmask (!%p329_p3), 195584  }
   0x7   : > { %332 = sbr.rel (%p329_p3) target bundleno = 267 (0x10b), region = 44  ;;  %v479_v4 = vunpack.c.l.bf16 (!%p329_p3), %v476_v0  ;;  %v481_v5 = vunpack.c.l.bf16 (!%p329_p3), %v477_v1  ;;  %v1531_v6 = vcombine.high (!%p329_p3), %v476_v0, %v477_v1  ;;  %v1533_v7 = vcombine.low (!%p329_p3), %v476_v0, %v477_v1  ;;  %847 = vmatprep.mubr.f32.mxu0 (!%p329_p3), %v1462_v8  ;;  %570 = vmatprep.mubr.f32.mxu1 (!%p329_p3), %v1462_v8 }
   0x8   : > { %v1537_v9 = vunpack.c.h.bf16 (!%p329_p3), %v478_v2  ;;  %v480_v12 = vunpack.c.h.bf16 (!%p329_p3), %v476_v0  ;;  %v482_v13 = vunpack.c.h.bf16 (!%p329_p3), %v477_v1  ;;  %v1549_v14 = vunpack.c.l.bf16 (!%p329_p3), %v478_v2 }
   0x9   : > { %v1541_v10 = vsub.f32 (!%p329_p3), %v479_v4, %v479_v4  ;;  %v1543_v11 = vsub.f32 (!%p329_p3), %v481_v5, %v481_v5  ;;  %1356 = vmatprep.subr.bf16.mxu0 (!%p329_p3), %v1531_v6  ;;  %1344 = vmatprep.subr.bf16.mxu1 (!%p329_p3), %v1531_v6  ;;  %v1555_v15 = vshrl.u32 (!%p329_p3), %v1048_v3, 7  ;;  %vm1050_vm3 = vcmp.lt.s32.totalorder (!%p329_p3), %v1048_v3, 256 }
   0xa   : > { %1358 = vmatpush1.bf16.msra.mxu0 (!%p329_p3), %v1533_v7  ;;  %1346 = vmatpush1.bf16.msra.mxu1 (!%p329_p3), %v1533_v7  ;;  %v1565_v16 = vsub.f32 (!%p329_p3), %v480_v12, %v480_v12  ;;  %v1572_v18 = vsub.f32 (!%p329_p3), %v482_v13, %v482_v13  ;;  %v1577_v20 = vsub.f32 (!%p329_p3), %v1537_v9, %v1537_v9 }
   0xb   : > { %787 = vmatprep.subr.mxu0 (!%p329_p3), %v1537_v9  ;;  %510 = vmatprep.subr.mxu1 (!%p329_p3), %v1537_v9  ;;  %v599_v19 = vand.u32 (!%p329_p3), 4294901760, %v1541_v10  ;;  %v609_v25 = vand.u32 (!%p329_p3), 4294901760, %v1543_v11  ;;  %vm1059_vm1 = vcmp.ge.s32.totalorder (!%p329_p3), %v1555_v15, 4  ;;  %v1597_v29 = vsub.f32 (!%p329_p3), %v1549_v14, %v1549_v14 }
   0xc   : > { %v594_v24 = vand.u32 (!%p329_p3), 4294901760, %v1565_v16  ;;  %v604_v31 = vand.u32 (!%p329_p3), 4294901760, %v1572_v18  ;;  %v614_v33 = vand.u32 (!%p329_p3), 4294901760, %v1577_v20  ;;  %vm1094_vm2 = vcmp.eq.s32.totalorder (!%p329_p3), %v1555_v15, 0 }
   0xd   : > { %v600_v32 = vsub.f32 (!%p329_p3), %v1541_v10, %v599_v19  ;;  %v1361_v37 = vpack.c.bf16 (!%p329_p3), %v609_v25, %v599_v19  ;;  %v610_v52 = vsub.f32 (!%p329_p3), %v1543_v11, %v609_v25  ;;  %v619_v62 = vand.u32 (!%p329_p3), 4294901760, %v1597_v29 }
   0xe   : > { %s1712_s24 = smov (!%p410_p4, %s1452_s24), 1  ;;  %788 = vmatpush1.msra.mxu0 %v1549_v14  ;;  %511 = vmatpush1.msra.mxu1 %v1549_v14  ;;  %v595_v36 = vsub.f32 %v1565_v16, %v594_v24  ;;  %v1359_v44 = vpack.c.bf16 %v604_v31, %v594_v24  ;;  %v605_v46 = vsub.f32 %v1572_v18, %v604_v31  ;;  %v1463_v19 = vmov 0  }
   0xf   : > { %s1552_s11 = sshll.u32 %s1712_s24, 4  ;;  %v601_v50 = vand.u32 4294901760, %v600_v32  ;;  %v615_v54 = vsub.f32 %v1577_v20, %v614_v33  ;;  %v611_v61 = vand.u32 4294901760, %v610_v52  ;;  %v620_v5 = vsub.f32 %v1597_v29, %v619_v62  ;;  %1423 = vset.pattern.permute.xlu0 %v1463_v19  ;;  %s1338_s28 = sshll.u32 %s1712_s24, 3 }
  0x10   : > { %s1562_s14 = scalar_lea.vmem %s1699_s0, %s1552_s11  ;;  %s454_s17 = scalar_lea.vmem %s1704_s5, %s1552_s11  ;;  %v596_v45 = vand.u32 4294901760, %v595_v36  ;;  %1360 = vmatprep.subr.bf16.mxu0 %v1359_v44  ;;  %v606_v51 = vand.u32 4294901760, %v605_v46  ;;  %v1351_v32 = vpack.c.bf16 %v1572_v18, %v1565_v16  ;;  %v1353_v36 = vpack.c.bf16 %v1543_v11, %v1541_v10 }
  0x11   : > { %v485_v17 = vld [vmem:[%s1562_s14] sm:$0xff]  ;;  %v1582_v23 = vld [vmem:[%s454_s17 + $0x8] sm:$0xff]  ;;  %s1628_s20 = scalar_lea.vmem %s1700_s1, %s1552_s11  ;;  %v616_v2 = vand.u32 4294901760, %v615_v54  ;;  %v1349_v4 = vpack.c.bf16 %v611_v61, %v601_v50  ;;  %v621_v25 = vand.u32 4294901760, %v620_v5  ;;  %s474_s23 = scalar_lea.vmem %s1706_s7, %s1552_s11 }
  0x12   : > { %v501_v21 = vsel %vm499_vm0, %v485_v17, 0  ;;  %v1580_v22 = vld [vmem:[%s454_s17] sm:$0xff]  ;;  %v1073_v28 = vmul.f32 %v1582_v23, %v1582_v23  ;;  %v486_v42 = vld [vmem:[%s1562_s14 + $0x8] sm:$0xf]  ;;  %v1061_v43 = vmul.f32 0.5, %v1582_v23  ;;  %v1347_v60 = vpack.c.bf16 %v606_v51, %v596_v45  ;;  %s434_s8 = scalar_lea.vmem %s1702_s3, %s1338_s28  ;;  %s444_s11 = scalar_lea.vmem %s1703_s4, %s1338_s28 }
  0x13   : > { %v1587_v26 = vand.u32 4294901760, %v501_v21  ;;  %v1072_v27 = vmul.f32 %v1580_v22, %v1580_v22  ;;  %v1060_v39 = vmul.f32 0.5, %v1580_v22  ;;  %v504_v53 = vsel %vm499_vm0, %v486_v42, 0  ;;  %s1341_s12 = sshll.u32 %s1712_s24, 5 }
  0x14   : > { %v1075_v35 = vsel %vm1059_vm1, %v1073_v28, 0.0  ;;  %v1620_v58 = vand.u32 4294901760, %v504_v53  ;;  %v1068_v59 = vmul.f32 1.442695, %v1580_v22  ;;  %1348 = vmatprep.subr.bf16.mxu1 %v1347_v60  ;;  %v1070_v24 = vmul.f32 1.442695, %v1582_v23  ;;  %s464_s15 = scalar_lea.vmem %s1705_s6, %s1341_s12 }
  0x15   : > { %v1600_v30 = vsub.f32 %v501_v21, %v1587_v26  ;;  %v1074_v34 = vsel %vm1059_vm1, %v1072_v27, 0.0  ;;  %v1082_v41 = vrot.slane %v1075_v35, 4  ;;  %1426 = vtanh.f32 %v1060_v39  ;;  %v487_v21 = vld [vmem:[%s1628_s20] sm:$0xff]  ;;  %1333 = vst.msk [vmem:[%s464_s15 + $0x17] ss:$8 sm:$0x3] %vm1050_vm3, %v1462_v8 }
  0x16   : > { %v1076_v40 = vrot.slane %v1074_v34, 4  ;;  %v1631_v1 = vsub.f32 %v504_v53, %v1620_v58  ;;  %1428 = vtanh.f32 %v1061_v43  ;;  %491 = vperm.xlu0 %1423, %v487_v21  }
  0x17   : > { %v573_v38 = vand.u32 4294901760, %v1600_v30  ;;  %v1083_v48 = vadd.f32 %v1082_v41, %v1075_v35  ;;  %1430 = vpow2.f32 %v1068_v59 }
  0x18   : > { %v1077_v47 = vadd.f32 %v1076_v40, %v1074_v34  ;;  %v584_v17 = vand.u32 4294901760, %v1631_v1  ;;  %1432 = vpow2.f32 %v1070_v24 }
  0x19   : > { %851 = vmatmul.mubr.f32.vlgmr.msra.gmra.mrb[0].mxu0 %v573_v38  ;;  %v574_v49 = vsub.f32 %v1600_v30, %v573_v38  ;;  %v1084_v56 = vrot.slane %v1083_v48, 2 }
  0x1a   : > { %856 = vmatprep.mubr.f32.mxu0 %v1462_v8  ;;  %v1078_v55 = vrot.slane %v1077_v47, 2  ;;  %1362 = vmatpush1.bf16.msra.mxu0 %v1361_v37  ;;  %v585_v31 = vsub.f32 %v1631_v1, %v584_v17 }
  0x1b   : > { %v575_v57 = vand.u32 4294901760, %v574_v49  ;;  %880 = vmatprep.subr.mxu0 %v614_v33  ;;  %v1085_v0 = vadd.f32 %v1084_v56, %v1083_v48 }
  0x1c   : > { %v1079_v63 = vadd.f32 %v1078_v55, %v1077_v47  ;;  %v586_v35 = vand.u32 4294901760, %v585_v31 }
  0x1d   : > { %576 = vmatmul.mubr.f32.vlgmr.msra.gmra.mrb[0].mxu1 %v575_v57  ;;  %v1086_v13 = vrot.slane %v1085_v0, 1  ;;  %860 = vmatmul.mubr.f32.gmra.mrb[2].mxu0 %v584_v17 }
  0x1e   : > { %581 = vmatprep.mubr.f32.mxu1 %v1462_v8  ;;  %v1080_v12 = vrot.slane %v1079_v63, 1  ;;  %883 = vmatpush1.msra.mxu0 %v619_v62 }
  0x1f   : > { %1350 = vmatpush1.bf16.msra.mxu1 %v1349_v4  ;;  %1364 = vmatprep.subr.bf16.mxu0 %v1531_v6  ;;  %v1087_v28 = vadd.f32 %v1086_v13, %v1085_v0  ;;  %v488_v6 = vld [vmem:[%s1628_s20 + $0x8] sm:$0xf]  ;;  %v1427_v16 = vpop.eup %1426 }
  0x20   : > { %v1081_v27 = vadd.f32 %v1080_v12, %v1079_v63  ;;  %617 = vmatprep.subr.mxu1 %v616_v2  ;;  %942 = vmatprep.mubr.f32.mxu0 %v1462_v8  ;;  %v1429_v18 = vpop.eup %1428  ;;  %v1064_v37 = vadd.f32 1.0, %v1427_v16 }
  0x21   : > { %v1089_v34 = vmax.f32 %v1087_v28, 1e-24  ;;  %587 = vmatmul.mubr.f32.gmra.mrb[2].mxu1 %v586_v35  ;;  %944 = vmatmul.mubr.f32.vlgmr.msra.gmra.mrb[0].mxu0 %v1587_v26  ;;  %v1065_v10 = vadd.f32 1.0, %v1429_v18 }
  0x22   : > { %v1088_v33 = vmax.f32 %v1081_v27, 1e-24  ;;  %681 = vmatprep.mubr.f32.mxu1 %v1462_v8  ;;  %949 = vmatprep.mubr.f32.mxu0 %v1462_v8  ;;  %v1066_v38 = vmul.f32 0.5, %v1064_v37 }
  0x23   : > { %622 = vmatpush1.msra.mxu1 %v621_v25  ;;  %1366 = vmatpush1.bf16.msra.mxu0 %v1533_v7  ;;  %v1431_v7 = vpop.eup %1430 }
  0x24   : > { %1434 = vrsqrt.f32 %v1088_v33  ;;  %1352 = vmatprep.subr.bf16.mxu1 %v1351_v32  ;;  %961 = vmatprep.subr.mxu0 %v1537_v9  ;;  %v1433_v9 = vpop.eup %1432 }
  0x25   : > { %1436 = vrsqrt.f32 %v1089_v34  ;;  %496 = vperm.xlu0 %1423, %v488_v6   ;;  %683 = vmatmul.mubr.f32.vlgmr.msra.gmra.mrb[0].mxu1 %v1587_v26 }
  0x26   : > { %951 = vmatmul.mubr.f32.gmra.mrb[2].mxu0 %v1620_v58  ;;  %1354 = vmatpush1.bf16.msra.mxu1 %v1353_v36 }
  0x27   : > { %688 = vmatprep.mubr.f32.mxu1 %v1462_v8  ;;  %705 = vmatprep.subr.mxu1 %v1577_v20 }
  0x28   : > { %962 = vmatpush1.msra.mxu0 %v1549_v14  ;;  %1021 = vmatprep.mubr.f32.mxu0 %v1462_v8  ;;  %v1067_v14 = vmul.f32 0.5, %v1065_v10 }
  0x29   : > { %690 = vmatmul.mubr.f32.gmra.mrb[2].mxu1 %v1620_v58 }
  0x2a   : > { %1023 = vmatmul.mubr.f32.vlgmr.msra.gmra.mrb[0].mxu0 %v1587_v26  ;;  %707 = vmatpush1.msra.mxu1 %v1597_v29 }
  0x2b   : > { %766 = vmatprep.mubr.f32.mxu1 %v1462_v8  ;;  %1028 = vmatprep.mubr.f32.mxu0 %v1462_v8 }
  0x2d   : > { %769 = vmatmul.mubr.f32.vlgmr.msra.gmra.mrb[0].mxu1 %v1600_v30  ;;  %v1041_v30 = vld [vmem:[%s444_s11] sm:$0x77] }
  0x2e   : > { %v1435_v11 = vpop.eup %1434  ;;  %1030 = vmatmul.mubr.f32.gmra.mrb[2].mxu0 %v1620_v58  ;;  %774 = vmatprep.mubr.f32.mxu1 %v1462_v8 }
  0x2f   : > { %v1437_v20 = vpop.eup %1436  ;;  %v1092_v39 = vmul.f32 %v1435_v11, %v1580_v22 }
  0x30   : > { %v1093_v26 = vmul.f32 %v1437_v20, %v1582_v23  ;;  %v1040_v23 = vld [vmem:[%s434_s8] sm:$0x77] }
  0x31   : > { %v1095_v29 = vsel %vm1059_vm1, %v1092_v39, %v1431_v7  ;;  %777 = vmatmul.mubr.f32.gmra.mrb[2].mxu1 %v1631_v1  ;;  %v1042_v42 = vadd.f32 %v1041_v30, %v1040_v23 }
  0x32   : > { %v1096_v22 = vsel %vm1059_vm1, %v1093_v26, %v1433_v9  ;;  %v1097_v40 = vsel %vm1094_vm2, %v1066_v38, %v1095_v29 }
  0x33   : > { %v1098_v41 = vsel %vm1094_vm2, %v1067_v14, %v1096_v22  ;;  %1099 = vst [vmem:[%s474_s23] sm:$0xff] %v1097_v40  ;;  %v1044_v15 = vcombine.low %v1042_v42, %v1042_v42  ;;  %1047 = vst [vmem:[%s464_s15 + $0x18] sm:$0x70] %v1042_v42 }
  0x34   : > { %1100 = vst [vmem:[%s474_s23 + $0x8] sm:$0xff] %v1098_v41 }
  0x35   : > { %1046 = vst [vmem:[%s464_s15 + $0x10] sm:$0x70] %v1044_v15 }
  0x95   : > { %v492_v45 = vpop.permute.xlu0 %491 }
  0xa4   : > { %v497_v3 = vpop.permute.xlu0 %496 }
  0xfd   : > { %v1024_v43 = vpop.f32.mrb[0].mxu0 }
  0xfe   : > { %v1026_v44 = vpop.f32.mrb[1].mxu0 }
 0x100   : > { %v770_v46 = vpop.f32.mrb[0].mxu1 }
 0x101   : > { %v1031_v47 = vpop.f32.mrb[2].mxu0  ;;  %v1367_v48 = vadd.f32 %v770_v46, %v492_v45  ;;  %v772_v49 = vpop.f32.mrb[1].mxu1 }
 0x102   : > { %v1033_v50 = vpop.f32.mrb[3].mxu0  ;;  %v1369_v51 = vadd.f32 %v772_v49, %v492_v45 }
 0x103   : > { %v1368_v52 = vadd.f32 %v1367_v48, %v1024_v43 }
 0x104   : > { %v1370_v53 = vadd.f32 %v1369_v51, %v1026_v44  ;;  %v778_v54 = vpop.f32.mrb[2].mxu1 }
 0x105   : > { %1036 = vst [vmem:[%s464_s15] sm:$0xff] %v1368_v52  ;;  %v1371_v55 = vadd.f32 %v778_v54, %v497_v3  ;;  %v780_v56 = vpop.f32.mrb[3].mxu1 }
 0x106   : > { %1037 = vst [vmem:[%s464_s15 + $0x8] sm:$0xff] %v1370_v53  ;;  %v1373_v57 = vadd.f32 %v780_v56, %v497_v3 }
 0x107   : > { %v1372_v58 = vadd.f32 %v1371_v55, %v1031_v47 }
 0x108   : > { %v1374_v8 = vadd.f32 %v1373_v57, %v1033_v50 }
 0x109   : > { %1038 = vst [vmem:[%s464_s15 + $0x10] sm:$0xf] %v1372_v58 }
 0x10a   : > { %1039 = vst [vmem:[%s464_s15 + $0x18] sm:$0xf] %v1374_v8 }
 0x10b PF: > { %s18_s26 = sadd.s32 1, %s1460_s26   ;;  %s1707_s24 = smov %s1456_s25 }
 0x10c   : > { %p15_p5 = scmp.ge.s32.totalorder %s18_s26, 4   ;;  %s1708_s25 = smov %s1710_s27 }
 0x10e   :  { %17 = sbr.rel (!%p15_p5) target bundleno = 2 (0x2), region = 102 }

</bundles_post_ra>
